<compile_context>
chip_gen: v7x
topology: tpu7x:2x2x1
jax: 0.10.0
libtpu: 0.0.40
codegen_flags: <defaults>
</compile_context>

<pallas_src>
import jax
import jax.numpy as jnp
from jax.experimental import pallas as pl
from jax.experimental.pallas import tpu as pltpu

ALPHA = 2  # module default alpha=2 (integer power -> plain VPU multiply)


def _round_up(v, m):
    return ((v + m - 1) // m) * m


def _gdl_kernel(x_ref, y_ref, o_ref):
    # x_ref / y_ref / o_ref: [4, bn], rows are (h, w) = (0,0), (0,1), (1,0), (1,1)
    x = x_ref[...].astype(jnp.float32)
    y = y_ref[...].astype(jnp.float32)

    x00, x01, x10, x11 = x[0:1, :], x[1:2, :], x[2:3, :], x[3:4, :]
    y00, y01, y10, y11 = y[0:1, :], y[1:2, :], y[2:3, :], y[3:4, :]

    # t1: gradient difference along H (two distinct lane vectors, one per w)
    t1_w0 = jnp.square(jnp.abs(jnp.abs(x10 - x00) - jnp.abs(y10 - y00)))
    t1_w1 = jnp.square(jnp.abs(jnp.abs(x11 - x01) - jnp.abs(y11 - y01)))
    # t2: gradient difference along W (two distinct lane vectors, one per h)
    t2_h0 = jnp.square(jnp.abs(jnp.abs(x00 - x01) - jnp.abs(y00 - y01)))
    t2_h1 = jnp.square(jnp.abs(jnp.abs(x10 - x11) - jnp.abs(y10 - y11)))

    # loss[h, w] = t1[w] + t2[h]; output row order = h*2 + w
    out = jnp.concatenate(
        [t1_w0 + t2_h0,   # (h=0, w=0)
         t1_w1 + t2_h0,   # (h=0, w=1)
         t1_w0 + t2_h1,   # (h=1, w=0)
         t1_w1 + t2_h1],  # (h=1, w=1)
        axis=0,
    )
    o_ref[...] = out.astype(o_ref.dtype)


def gradient_difference_loss(x, y, *, block_n=4096):
    """x, y: [N, C, D, H, W] float arrays with H == W == 2.

    Returns t1 + t2 exactly like the PyTorch module (shape [N, C, D, 2, 2]).
    """
    assert x.shape == y.shape and x.ndim == 5, (x.shape, y.shape)
    N, C, D, H, W = x.shape
    # The PyTorch `t1 + t2` broadcast is only legal for H == 2 and W == 2.
    assert H == 2 and W == 2, (
        "GradientDifferenceLoss broadcast t1 + t2 requires H == 2 and W == 2, "
        f"got H={H}, W={W}"
    )

    B = N * C * D
    # Lane-dense layout: [4, B], row index = h*2 + w.
    x2 = x.reshape(B, 4).T
    y2 = y.reshape(B, 4).T

    # Lane block: multiple of 128, capped at block_n; pad B so the grid divides.
    bn = min(_round_up(block_n, 128), _round_up(B, 128))
    Bp = _round_up(B, bn)
    if Bp != B:
        pad = ((0, 0), (0, Bp - B))
        x2 = jnp.pad(x2, pad)
        y2 = jnp.pad(y2, pad)

    grid = (Bp // bn,)

    out2 = pl.pallas_call(
        _gdl_kernel,
        out_shape=jax.ShapeDtypeStruct((4, Bp), x.dtype),
        grid_spec=pltpu.PrefetchScalarGridSpec(
            num_scalar_prefetch=0,
            grid=grid,
            in_specs=[
                pl.BlockSpec((4, bn), lambda i: (0, i)),
                pl.BlockSpec((4, bn), lambda i: (0, i)),
            ],
            out_specs=pl.BlockSpec((4, bn), lambda i: (0, i)),
        ),
        compiler_params=pltpu.CompilerParams(
            dimension_semantics=("parallel",),  # shards grid across TCs on v7x
        ),
    )(x2, y2)

    # Undo padding / transpose / reshape.
    out = out2[:, :B].T.reshape(N, C, D, 2, 2)
    return out


def _reference(x, y, alpha=ALPHA):
    t1 = jnp.abs(
        jnp.abs(x[:, :, :, 1:, :] - x[:, :, :, :-1, :])
        - jnp.abs(y[:, :, :, 1:, :] - y[:, :, :, :-1, :])
    ) ** alpha
    t2 = jnp.abs(
        jnp.abs(x[:, :, :, :, :-1] - x[:, :, :, :, 1:])
        - jnp.abs(y[:, :, :, :, :-1] - y[:, :, :, :, 1:])
    ) ** alpha
    return t1 + t2


if __name__ == "__main__":
    key = jax.random.PRNGKey(0)
    k1, k2 = jax.random.split(key)
    # NCDHW with H = W = 2 (the only spatial sizes for which the PyTorch
    # module's broadcast `t1 + t2` is legal).
    shape = (2, 4, 16, 2, 2)
    x = jax.random.normal(k1, shape, dtype=jnp.float32)
    y = jax.random.normal(k2, shape, dtype=jnp.float32)

    out = gradient_difference_loss(x, y)
    out = jax.block_until_ready(out)

    ref = _reference(x, y)
    assert out.shape == ref.shape, (out.shape, ref.shape)
    assert jnp.allclose(out, ref, atol=1e-5, rtol=1e-5)

    print("KERNEL_OK")
</pallas_src>

<mosaic_0001>
module attributes {stable_mosaic.version = 11 : i64} {
  func.func @_gdl_kernel(%arg0: i32, %arg1: memref<4x128xf32, #tpu.memory_space<vmem>>, %arg2: memref<4x128xf32, #tpu.memory_space<vmem>>, %arg3: memref<4x128xf32, #tpu.memory_space<vmem>>) attributes {dimension_semantics = [#tpu.dimension_semantics<parallel>], iteration_bounds = array<i64: 1>, scalar_prefetch = 0 : i64, scratch_operands = 0 : i64, tpu.core_type = #tpu.core_type<tc>, window_params = [{transform_indices = @transform_0, window_bounds = array<i64: 4, 128>}, {transform_indices = @transform_1, window_bounds = array<i64: 4, 128>}, {transform_indices = @transform_2, window_bounds = array<i64: 4, 128>}]} {
    %c0 = arith.constant 0 : index
    %c0_0 = arith.constant 0 : index
    %0 = vector.load %arg1[%c0, %c0_0] : memref<4x128xf32, #tpu.memory_space<vmem>>, vector<4x128xf32>
    %c0_1 = arith.constant 0 : index
    %c0_2 = arith.constant 0 : index
    %1 = vector.load %arg2[%c0_1, %c0_2] : memref<4x128xf32, #tpu.memory_space<vmem>>, vector<4x128xf32>
    %2 = vector.extract_strided_slice %0 {offsets = [0, 0], sizes = [1, 128], strides = [1, 1]} : vector<4x128xf32> to vector<1x128xf32>
    %3 = vector.extract_strided_slice %0 {offsets = [1, 0], sizes = [1, 128], strides = [1, 1]} : vector<4x128xf32> to vector<1x128xf32>
    %4 = vector.extract_strided_slice %0 {offsets = [2, 0], sizes = [1, 128], strides = [1, 1]} : vector<4x128xf32> to vector<1x128xf32>
    %5 = vector.extract_strided_slice %0 {offsets = [3, 0], sizes = [1, 128], strides = [1, 1]} : vector<4x128xf32> to vector<1x128xf32>
    %6 = vector.extract_strided_slice %1 {offsets = [0, 0], sizes = [1, 128], strides = [1, 1]} : vector<4x128xf32> to vector<1x128xf32>
    %7 = vector.extract_strided_slice %1 {offsets = [1, 0], sizes = [1, 128], strides = [1, 1]} : vector<4x128xf32> to vector<1x128xf32>
    %8 = vector.extract_strided_slice %1 {offsets = [2, 0], sizes = [1, 128], strides = [1, 1]} : vector<4x128xf32> to vector<1x128xf32>
    %9 = vector.extract_strided_slice %1 {offsets = [3, 0], sizes = [1, 128], strides = [1, 1]} : vector<4x128xf32> to vector<1x128xf32>
    %10 = arith.subf %4, %2 : vector<1x128xf32>
    %11 = math.absf %10 : vector<1x128xf32>
    %12 = arith.subf %8, %6 : vector<1x128xf32>
    %13 = math.absf %12 : vector<1x128xf32>
    %14 = arith.subf %11, %13 : vector<1x128xf32>
    %15 = math.absf %14 : vector<1x128xf32>
    %16 = arith.mulf %15, %15 : vector<1x128xf32>
    %17 = arith.subf %5, %3 : vector<1x128xf32>
    %18 = math.absf %17 : vector<1x128xf32>
    %19 = arith.subf %9, %7 : vector<1x128xf32>
    %20 = math.absf %19 : vector<1x128xf32>
    %21 = arith.subf %18, %20 : vector<1x128xf32>
    %22 = math.absf %21 : vector<1x128xf32>
    %23 = arith.mulf %22, %22 : vector<1x128xf32>
    %24 = arith.subf %2, %3 : vector<1x128xf32>
    %25 = math.absf %24 : vector<1x128xf32>
    %26 = arith.subf %6, %7 : vector<1x128xf32>
    %27 = math.absf %26 : vector<1x128xf32>
    %28 = arith.subf %25, %27 : vector<1x128xf32>
    %29 = math.absf %28 : vector<1x128xf32>
    %30 = arith.mulf %29, %29 : vector<1x128xf32>
    %31 = arith.subf %4, %5 : vector<1x128xf32>
    %32 = math.absf %31 : vector<1x128xf32>
    %33 = arith.subf %8, %9 : vector<1x128xf32>
    %34 = math.absf %33 : vector<1x128xf32>
    %35 = arith.subf %32, %34 : vector<1x128xf32>
    %36 = math.absf %35 : vector<1x128xf32>
    %37 = arith.mulf %36, %36 : vector<1x128xf32>
    %38 = arith.addf %16, %30 : vector<1x128xf32>
    %39 = arith.addf %23, %30 : vector<1x128xf32>
    %40 = arith.addf %16, %37 : vector<1x128xf32>
    %41 = arith.addf %23, %37 : vector<1x128xf32>
    %42 = tpu.concatenate %38, %39, %40, %41 in 0 : vector<1x128xf32>, vector<1x128xf32>, vector<1x128xf32>, vector<1x128xf32> -> vector<4x128xf32>
    %c0_3 = arith.constant 0 : index
    %c0_4 = arith.constant 0 : index
    %43 = vector.load %arg3[%c0_3, %c0_4] : memref<4x128xf32, #tpu.memory_space<vmem>>, vector<4x128xf32>
    tpu.vector_store %arg3[%c0_3, %c0_4], %42 {strides = array<i32>} : memref<4x128xf32, #tpu.memory_space<vmem>>, vector<4x128xf32>,
    return
  }
  func.func @transform_0(%arg0: i32) -> (i32, i32) {
    %c0_i32 = arith.constant 0 : i32
    %c0_i32_0 = arith.constant 0 : i32
    return %c0_i32, %arg0 : i32, i32
  }
  func.func @transform_1(%arg0: i32) -> (i32, i32) {
    %c0_i32 = arith.constant 0 : i32
    %c0_i32_0 = arith.constant 0 : i32
    return %c0_i32, %arg0 : i32, i32
  }
  func.func @transform_2(%arg0: i32) -> (i32, i32) {
    %c0_i32 = arith.constant 0 : i32
    %c0_i32_0 = arith.constant 0 : i32
    return %c0_i32, %arg0 : i32, i32
  }
}

</mosaic_0001>

<bundles_post_ra>
// kernel: tpu_custom_call.1
= control target key start
LH: loop header
LB: loop body
LE: loop exit
PB: predicated region body
PF: predicated region fallthrough
CT: control target
= control target key end

     0   :  { %7 = vsyncpa [#allocation3], 0  ;;  %s231_s0 = inlined_call_operand.hbm [shape: f32[4,128], index: 0, kind: input, shape index: {}]   ;;  %s232_s1 = inlined_call_operand.hbm [shape: f32[4,128], index: 1, kind: input, shape index: {}]   ;;  %s233_s2 = inlined_call_operand.hbm [shape: f32[4,128], index: 2, kind: output, shape index: {}]  }
   0x1   :  { %8 = vsyncpa [#allocation6], 0 }
   0x2   :  { %9 = vsyncpa [#allocation4], 0  ;;  %s177_s9 = smov [#allocation2]   ;;  %s178_s11 = smov [#allocation5]  }
   0x3   :  { %s16_s10 = sshll.u32 %s177_s9, 4  ;;  %s26_s12 = sshll.u32 %s178_s11, 4  ;;  %s17_s10 = int_to_ptr.vmem [resolvable:$true] %s16_s10  ;;  %s27_s12 = int_to_ptr.vmem [resolvable:$true] %s26_s12 }
   0x4   :  { %s105_s15 = scalar_lea.hbm %s231_s0, 64 }
   0x5   :  { %p106_p0 = scmp.ne.s32.totalorder %s231_s0, %s105_s15  ;;  %p109_p1 = scmp.lt.u32.totalorder %s105_s15, %s231_s0 }
   0x7   :  { %p111_p2 = pnand %p109_p1, %p106_p0 }
   0x9   :  { %114 = shalt.err (!%p111_p2)
}
   0xa   :  { %s115_s20 = scalar_lea.vmem %s17_s10, 64  ;;  %p120_p4 = scmp.lt.s32.totalorder %s17_s10, %s17_s10 }
   0xb   :  { %p116_p3 = scmp.ne.s32.totalorder %s17_s10, %s115_s20  ;;  %p121_p5 = scmp.lt.s32.totalorder %s115_s20, %s115_s20 }
   0xd   :  { %p122_p6 = por %p121_p5, %p120_p4 }
   0xf   :  { %p123_p7 = pnand %p122_p6, %p116_p3 }
  0x11   :  { %126 = shalt.err (!%p123_p7)
}
  0x12   :  { %19 = dma.hbm_to_vmem [thread:$0]  %s231_s0, 64, %s17_s10, [#allocation3]  }
  0x13   :  { %s127_s25 = scalar_lea.hbm %s232_s1, 64 }
  0x14   :  { %p128_p8 = scmp.ne.s32.totalorder %s232_s1, %s127_s25  ;;  %p131_p9 = scmp.lt.u32.totalorder %s127_s25, %s232_s1 }
  0x16   :  { %p133_p10 = pnand %p131_p9, %p128_p8 }
  0x18   :  { %136 = shalt.err (!%p133_p10)
}
  0x19   :  { %s137_s30 = scalar_lea.vmem %s27_s12, 64  ;;  %p142_p12 = scmp.lt.s32.totalorder %s27_s12, %s27_s12 }
  0x1a   :  { %p138_p11 = scmp.ne.s32.totalorder %s27_s12, %s137_s30  ;;  %p143_p13 = scmp.lt.s32.totalorder %s137_s30, %s137_s30 }
  0x1c   :  { %p144_p0 = por %p143_p13, %p142_p12 }
  0x1e   :  { %p145_p1 = pnand %p144_p0, %p138_p11 }
  0x20   :  { %148 = shalt.err (!%p145_p1)
}
  0x21   :  { %29 = dma.hbm_to_vmem [thread:$0]  %s232_s1, 64, %s27_s12, [#allocation6]  }
  0x22   :  { %171 = dma.done.wait [#allocation3], 64  }
  0x23   :  { %172 = vsyncadd [#allocation3], 4294967232 }
  0x24   :  { %173 = dma.done.wait [#allocation6], 64  }
  0x25   :  { %174 = vsyncadd [#allocation6], 4294967232  ;;  %v36_v0 = vld [vmem:[#allocation2] sm:$0xf]  ;;  %v37_v1 = vld [vmem:[#allocation5] sm:$0xf] }
  0x26   :  { %v39_v2 = vrot.slane %v36_v0, 6  ;;  %v44_v3 = vrot.slane %v37_v1, 6  ;;  %v51_v4 = vrot.slane %v36_v0, 1  ;;  %v55_v5 = vrot.slane %v37_v1, 1  ;;  %s179_s1 = smov [#allocation7]  }
  0x27   :  { %vm79_vm0 = vcmask 1040384   ;;  %vm81_vm1 = vcmask 1041408   ;;  %s92_s4 = sshll.u32 %s179_s1, 4  ;;  %vm83_vm2 = vcmask 1042432   ;;  %s93_s4 = int_to_ptr.vmem [resolvable:$true] %s92_s4 }
  0x28   :  { %v41_v6 = vsub.f32 %v36_v0, %v39_v2  ;;  %v46_v7 = vsub.f32 %v37_v1, %v44_v3  ;;  %v53_v8 = vsub.f32 %v36_v0, %v51_v4  ;;  %v57_v9 = vsub.f32 %v37_v1, %v55_v5  ;;  %s149_s5 = scalar_lea.vmem %s93_s4, 64  ;;  %p154_p3 = scmp.lt.s32.totalorder %s93_s4, %s93_s4 }
  0x29   :  { %p150_p2 = scmp.ne.s32.totalorder %s93_s4, %s149_s5  ;;  %p155_p4 = scmp.lt.s32.totalorder %s149_s5, %s149_s5 }
  0x2a   :  { %v42_v10 = vand.u32 2147483647, %v41_v6  ;;  %v47_v11 = vand.u32 2147483647, %v46_v7  ;;  %v54_v12 = vand.u32 2147483647, %v53_v8 }
  0x2b   :  { %v58_v13 = vand.u32 2147483647, %v57_v9  ;;  %p156_p5 = por %p155_p4, %p154_p3 }
  0x2c   :  { %v48_v14 = vsub.f32 %v42_v10, %v47_v11 }
  0x2d   :  { %v59_v15 = vsub.f32 %v54_v12, %v58_v13  ;;  %p157_p6 = pnand %p156_p5, %p150_p2 }
  0x2e   :  { %v49_v16 = vand.u32 2147483647, %v48_v14 }
  0x2f   :  { %v60_v17 = vand.u32 2147483647, %v59_v15 }
  0x30   :  { %v50_v18 = vmul.f32 %v49_v16, %v49_v16 }
  0x31   :  { %v61_v19 = vmul.f32 %v60_v17, %v60_v17 }
  0x33   :  { %v63_v20 = vrot.slane %v61_v19, 6  ;;  %v66_v21 = vrot.slane %v61_v19, 5  ;;  %v70_v22 = vrot.slane %v61_v19, 7  ;;  %v69_v25 = vadd.f32 %v61_v19, %v50_v18 }
  0x35   :  { %v65_v23 = vadd.f32 %v63_v20, %v50_v18  ;;  %v68_v24 = vadd.f32 %v66_v21, %v50_v18  ;;  %v72_v26 = vadd.f32 %v70_v22, %v50_v18 }
  0x37   :  { %v74_v27 = vrot.slane %v65_v23, 2  ;;  %v77_v28 = vrot.slane %v68_v24, 2 }
  0x39   :  { %v80_v29 = vsel %vm79_vm0, %v74_v27, %v77_v28 }
  0x3a   :  { %v82_v30 = vsel %vm81_vm1, %v80_v29, %v69_v25 }
  0x3b   :  { %v84_v31 = vsel %vm83_vm2, %v82_v30, %v72_v26 }
  0x3c   :  { %85 = vst [vmem:[#allocation7] sm:$0xf] %v84_v31 }
  0x3d   :  { %160 = shalt.err (!%p157_p6)
}
  0x3e   :  { %s161_s8 = scalar_lea.hbm %s233_s2, 64 }
  0x3f   :  { %p162_p7 = scmp.ne.s32.totalorder %s233_s2, %s161_s8  ;;  %p165_p8 = scmp.lt.u32.totalorder %s161_s8, %s233_s2 }
  0x41   :  { %p167_p9 = pnand %p165_p8, %p162_p7 }
  0x43   :  { %170 = shalt.err (!%p167_p9)
}
  0x44   :  { %95 = dma.vmem_to_hbm [thread:$0]  %s93_s4, 64, %s233_s2, [#allocation4]  }
  0x45   :  { %175 = dma.done.wait [#allocation4], 64  }
  0x46   :  { %176 = vsyncadd [#allocation4], 4294967232 }
  0x47   :  { %99 = vsyncpa [#allocation3], 1 }
  0x48   :  { %100 = vsyncpa [#allocation6], 1 }
  0x49   :  { %101 = vsyncpa [#allocation4], 1 }

</bundles_post_ra>
